<compile_context>
chip_gen: v6e
topology: v6e:2x2x1
jax: 0.10.0
libtpu: 0.0.40
codegen_flags: <defaults>
</compile_context>

<pallas_src>
import jax
import jax.numpy as jnp
from jax.experimental import pallas as pl
from jax.experimental.pallas import tpu as pltpu

NUM_CLASSES = 5
ENET_OUT_SIZE = 1280

# Batches at or below this run as a single un-gridded kernel (x + out + params
# resident in VMEM; at 6144 rows that is ~30.3 MiB of f32 x).
_SMALL_B_THRESHOLD = 6144
# Batch tile for the gridded streaming path (multiple of 8).
_BATCH_TILE = 1024

_MIB = 1 << 20


def _linear_kernel(x_ref, w_ref, b_ref, o_ref):
    # x_ref: (tm, F) f32, w_ref: (F, N) f32, b_ref: (1, N) f32, o_ref: (tm, N)
    o_ref[...] = (
        jnp.dot(x_ref[...], w_ref[...], preferred_element_type=jnp.float32)
        + b_ref[...]
    )


def prepare_params(weight, bias):
    """One-time parameter prep, hoisted out of the per-call path.

    weight: (num_classes, 1280) float32  (PyTorch nn.Linear layout)
    bias:   (num_classes,)      float32
    """
    w_t = jnp.asarray(weight, jnp.float32).T              # (F, N), unpadded
    b_p = jnp.asarray(bias, jnp.float32).reshape(1, -1)   # (1, N)
    return w_t, b_p


def _cost_estimate(B, F, N):
    return pl.CostEstimate(
        flops=2 * B * F * N,
        transcendentals=0,
        bytes_accessed=4 * (B * F + F * N + N + B * N),
    )


@jax.jit
def _forward_small(x, w_t, b_p):
    """Un-gridded path: whole problem resident in VMEM, single DMA each way."""
    B, F = x.shape
    N = w_t.shape[1]
    need_bytes = 4 * (B * F + F * N + N + B * N)
    # Explicit limit so mid-size batches are accepted regardless of the chip's
    # scoped-VMEM default (v5e 16 MiB / v6e 32 MiB / v7x 32 MiB). Worst case
    # here (B=6144) is ~38 MiB, well under v7x's 64 MiB physical VMEM.
    vmem_limit = need_bytes + 8 * _MIB
    return pl.pallas_call(
        _linear_kernel,
        out_shape=jax.ShapeDtypeStruct((B, N), jnp.float32),
        in_specs=[
            pl.BlockSpec(memory_space=pltpu.MemorySpace.VMEM),
            pl.BlockSpec(memory_space=pltpu.MemorySpace.VMEM),
            pl.BlockSpec(memory_space=pltpu.MemorySpace.VMEM),
        ],
        out_specs=pl.BlockSpec(memory_space=pltpu.MemorySpace.VMEM),
        compiler_params=pltpu.CompilerParams(vmem_limit_bytes=vmem_limit),
        cost_estimate=_cost_estimate(B, F, N),
    )(x, w_t, b_p)


@jax.jit
def _forward_tiled(x, w_t, b_p):
    """Gridded streaming path for large B.

    x/out tiles are pipelined (double-buffered) along the batch axis; the
    weight/bias blocks are full-array with a constant index_map, so they stay
    resident in VMEM. The 'parallel' axis shards row tiles across the two
    TensorCores on v7x.
    """
    B, F = x.shape
    N = w_t.shape[1]
    tm = _BATCH_TILE
    # Double-buffered x (2 * tm * F * 4 ~= 10 MiB at tm=1024) + tiny out
    # buffers + resident weight. 24 MiB is safe on every generation and
    # explicitly overrides v5e's 16 MiB scoped default headroom concerns.
    vmem_limit = 24 * _MIB
    return pl.pallas_call(
        _linear_kernel,
        out_shape=jax.ShapeDtypeStruct((B, N), jnp.float32),
        grid=(pl.cdiv(B, tm),),
        in_specs=[
            pl.BlockSpec((tm, F), lambda i: (i, 0)),
            pl.BlockSpec((F, N), lambda i: (0, 0)),
            pl.BlockSpec((1, N), lambda i: (0, 0)),
        ],
        out_specs=pl.BlockSpec((tm, N), lambda i: (i, 0)),
        compiler_params=pltpu.CompilerParams(
            dimension_semantics=("parallel",),
            vmem_limit_bytes=vmem_limit,
        ),
        cost_estimate=_cost_estimate(B, F, N),
    )(x, w_t, b_p)


def yield_per_acre_forward(x, w_t, b_p):
    """Equivalent of YieldPerAcre.forward: x @ weight.T + bias.

    x:   (B, 1280) float32
    w_t: (1280, num_classes) float32   (from prepare_params)
    b_p: (1, num_classes) float32      (from prepare_params)
    returns (B, num_classes) float32
    """
    if x.shape[0] <= _SMALL_B_THRESHOLD:
        return _forward_small(x, w_t, b_p)
    return _forward_tiled(x, w_t, b_p)


if __name__ == "__main__":
    key = jax.random.PRNGKey(0)
    k_x, k_w, k_b, k_x2 = jax.random.split(key, 4)

    # Deterministic synthetic parameters matching nn.Linear(1280, 5) shapes.
    bound = 1.0 / (ENET_OUT_SIZE ** 0.5)
    weight = jax.random.uniform(
        k_w, (NUM_CLASSES, ENET_OUT_SIZE), minval=-bound, maxval=bound,
        dtype=jnp.float32)
    bias = jax.random.uniform(
        k_b, (NUM_CLASSES,), minval=-bound, maxval=bound, dtype=jnp.float32)

    # One-time parameter prep (hoisted out of the forward path).
    w_t, b_p = prepare_params(weight, bias)

    # --- Small-batch (un-gridded) path ---
    B = 8
    x = jax.random.normal(k_x, (B, ENET_OUT_SIZE), dtype=jnp.float32)
    out = jax.block_until_ready(yield_per_acre_forward(x, w_t, b_p))
    ref = x @ weight.T + bias
    assert out.shape == (B, NUM_CLASSES)
    assert jnp.allclose(out, ref, atol=1e-4, rtol=1e-4)

    # --- Gridded streaming path (exercised directly for coverage) ---
    B2 = 2 * _BATCH_TILE
    x2 = jax.random.normal(k_x2, (B2, ENET_OUT_SIZE), dtype=jnp.float32)
    out2 = jax.block_until_ready(_forward_tiled(x2, w_t, b_p))
    ref2 = x2 @ weight.T + bias
    assert out2.shape == (B2, NUM_CLASSES)
    assert jnp.allclose(out2, ref2, atol=1e-4, rtol=1e-4)

    print("KERNEL_OK")
</pallas_src>

<mosaic_0001>
module attributes {stable_mosaic.version = 11 : i64} {
  func.func @_linear_kernel(%arg0: memref<8x1280xf32, #tpu.memory_space<vmem>>, %arg1: memref<1280x5xf32, #tpu.memory_space<vmem>>, %arg2: memref<1x5xf32, #tpu.memory_space<vmem>>, %arg3: memref<8x5xf32, #tpu.memory_space<vmem>>) attributes {dimension_semantics = [], scalar_prefetch = 0 : i64, scratch_operands = 0 : i64, tpu.core_type = #tpu.core_type<tc>} {
    %c0 = arith.constant 0 : index
    %c0_0 = arith.constant 0 : index
    %0 = vector.load %arg0[%c0, %c0_0] : memref<8x1280xf32, #tpu.memory_space<vmem>>, vector<8x1280xf32>
    %c0_1 = arith.constant 0 : index
    %c0_2 = arith.constant 0 : index
    %1 = vector.load %arg1[%c0_1, %c0_2] : memref<1280x5xf32, #tpu.memory_space<vmem>>, vector<1280x5xf32>
    %cst = arith.constant dense<0.000000e+00> : vector<8x5xf32>
    %2 = tpu.matmul %0, %1, %cst {dimension_numbers = #tpu.dot_dimension_numbers<[1], [0], [0], [1], [0, 0, 1, 1], [], []>} : vector<8x1280xf32>, vector<1280x5xf32>, vector<8x5xf32> -> vector<8x5xf32>
    %c0_3 = arith.constant 0 : index
    %c0_4 = arith.constant 0 : index
    %3 = vector.load %arg2[%c0_3, %c0_4] : memref<1x5xf32, #tpu.memory_space<vmem>>, vector<1x5xf32>
    %4 = vector.broadcast %3 : vector<1x5xf32> to vector<8x5xf32>
    %5 = arith.addf %2, %4 : vector<8x5xf32>
    %c0_5 = arith.constant 0 : index
    %c0_6 = arith.constant 0 : index
    %6 = vector.load %arg3[%c0_5, %c0_6] : memref<8x5xf32, #tpu.memory_space<vmem>>, vector<8x5xf32>
    tpu.vector_store %arg3[%c0_5, %c0_6], %5 {strides = array<i32>} : memref<8x5xf32, #tpu.memory_space<vmem>>, vector<8x5xf32>,
    return
  }
}

</mosaic_0001>

<bundles_post_ra>
// kernel: _forward_small.1
= control target key start
LH: loop header
LB: loop body
LE: loop exit
PB: predicated region body
PF: predicated region fallthrough
CT: control target
= control target key end

     0   :  { %s1294_s0 = inlined_call_operand.vmem [shape: f32[8,1280], index: 0, kind: input, shape index: {}]   ;;  %s1295_s1 = inlined_call_operand.vmem [shape: f32[1280,5], index: 1, kind: input, shape index: {}]   ;;  %s1296_s2 = inlined_call_operand.vmem [shape: f32[1,5], index: 2, kind: input, shape index: {}]   ;;  %s1297_s3 = inlined_call_operand.hbm [shape: f32[8,5], index: 3, kind: output, shape index: {}]  }
   0x1   :  { %v56_v0 = vld [vmem:[%s1295_s1 + $0xf8] sm:$0xff]  ;;  %v55_v2 = vld [vmem:[%s1295_s1 + $0xf0] sm:$0xff]  ;;  %v54_v6 = vld [vmem:[%s1295_s1 + $0xe8] sm:$0xff] }
   0x2   :  { %v40_v1 = vld [vmem:[%s1295_s1 + $0x78] sm:$0xff]  ;;  %559 = vmatprep.subr.mxu0 %v56_v0  ;;  %v39_v4 = vld [vmem:[%s1295_s1 + $0x70] sm:$0xff]  ;;  %v38_v8 = vld [vmem:[%s1295_s1 + $0x68] sm:$0xff] }
   0x3   :  { %v88_v3 = vld [vmem:[%s1295_s1 + $0x1f8] sm:$0xff]  ;;  %560 = vmatpush3.msra.mxu0 %v40_v1  ;;  %v87_v7 = vld [vmem:[%s1295_s1 + $0x1f0] sm:$0xff]  ;;  %v86_v10 = vld [vmem:[%s1295_s1 + $0x1e8] sm:$0xff] }
   0x4   :  { %v72_v5 = vld [vmem:[%s1295_s1 + $0x178] sm:$0xff]  ;;  %594 = vmatprep.subr.mxu1 %v88_v3  ;;  %561 = vmatprep.subr.mxu0 %v55_v2  ;;  %v71_v9 = vld [vmem:[%s1295_s1 + $0x170] sm:$0xff]  ;;  %v53_v11 = vld [vmem:[%s1295_s1 + $0xe0] sm:$0xff] }
   0x5   :  { %595 = vmatpush3.msra.mxu1 %v72_v5  ;;  %562 = vmatpush3.msra.mxu0 %v39_v4  ;;  %v70_v12 = vld [vmem:[%s1295_s1 + $0x168] sm:$0xff]  ;;  %v37_v13 = vld [vmem:[%s1295_s1 + $0x60] sm:$0xff]  ;;  %v52_v15 = vld [vmem:[%s1295_s1 + $0xd8] sm:$0xff] }
   0x6   :  { %596 = vmatprep.subr.mxu1 %v87_v7  ;;  %563 = vmatprep.subr.mxu0 %v54_v6  ;;  %v85_v14 = vld [vmem:[%s1295_s1 + $0x1e0] sm:$0xff]  ;;  %v36_v17 = vld [vmem:[%s1295_s1 + $0x58] sm:$0xff]  ;;  %v51_v19 = vld [vmem:[%s1295_s1 + $0xd0] sm:$0xff] }
   0x7   :  { %597 = vmatpush3.msra.mxu1 %v71_v9  ;;  %564 = vmatpush3.msra.mxu0 %v38_v8  ;;  %v69_v16 = vld [vmem:[%s1295_s1 + $0x160] sm:$0xff]  ;;  %v84_v18 = vld [vmem:[%s1295_s1 + $0x1d8] sm:$0xff]  ;;  %v35_v21 = vld [vmem:[%s1295_s1 + $0x50] sm:$0xff] }
   0x8   :  { %598 = vmatprep.subr.mxu1 %v86_v10  ;;  %565 = vmatprep.subr.mxu0 %v53_v11  ;;  %v68_v20 = vld [vmem:[%s1295_s1 + $0x158] sm:$0xff]  ;;  %v83_v22 = vld [vmem:[%s1295_s1 + $0x1d0] sm:$0xff]  ;;  %v50_v23 = vld [vmem:[%s1295_s1 + $0xc8] sm:$0xff] }
   0x9   :  { %599 = vmatpush3.msra.mxu1 %v70_v12  ;;  %566 = vmatpush3.msra.mxu0 %v37_v13  ;;  %v67_v24 = vld [vmem:[%s1295_s1 + $0x150] sm:$0xff]  ;;  %v34_v25 = vld [vmem:[%s1295_s1 + $0x48] sm:$0xff]  ;;  %v49_v27 = vld [vmem:[%s1295_s1 + $0xc0] sm:$0xff] }
   0xa   :  { %600 = vmatprep.subr.mxu1 %v85_v14  ;;  %567 = vmatprep.subr.mxu0 %v52_v15  ;;  %v82_v26 = vld [vmem:[%s1295_s1 + $0x1c8] sm:$0xff]  ;;  %v33_v29 = vld [vmem:[%s1295_s1 + $0x40] sm:$0xff]  ;;  %v48_v31 = vld [vmem:[%s1295_s1 + $0xb8] sm:$0xff] }
   0xb   :  { %601 = vmatpush3.msra.mxu1 %v69_v16  ;;  %568 = vmatpush3.msra.mxu0 %v36_v17  ;;  %v66_v28 = vld [vmem:[%s1295_s1 + $0x148] sm:$0xff]  ;;  %v81_v30 = vld [vmem:[%s1295_s1 + $0x1c0] sm:$0xff]  ;;  %v32_v33 = vld [vmem:[%s1295_s1 + $0x38] sm:$0xff] }
   0xc   :  { %602 = vmatprep.subr.mxu1 %v84_v18  ;;  %569 = vmatprep.subr.mxu0 %v51_v19  ;;  %v65_v32 = vld [vmem:[%s1295_s1 + $0x140] sm:$0xff]  ;;  %v80_v34 = vld [vmem:[%s1295_s1 + $0x1b8] sm:$0xff]  ;;  %v47_v35 = vld [vmem:[%s1295_s1 + $0xb0] sm:$0xff] }
   0xd   :  { %603 = vmatpush3.msra.mxu1 %v68_v20  ;;  %570 = vmatpush3.msra.mxu0 %v35_v21  ;;  %v64_v36 = vld [vmem:[%s1295_s1 + $0x138] sm:$0xff]  ;;  %v31_v37 = vld [vmem:[%s1295_s1 + $0x30] sm:$0xff]  ;;  %v46_v39 = vld [vmem:[%s1295_s1 + $0xa8] sm:$0xff] }
   0xe   :  { %604 = vmatprep.subr.mxu1 %v83_v22  ;;  %571 = vmatprep.subr.mxu0 %v50_v23  ;;  %v79_v38 = vld [vmem:[%s1295_s1 + $0x1b0] sm:$0xff]  ;;  %v30_v41 = vld [vmem:[%s1295_s1 + $0x28] sm:$0xff]  ;;  %v45_v43 = vld [vmem:[%s1295_s1 + $0xa0] sm:$0xff] }
   0xf   :  { %605 = vmatpush3.msra.mxu1 %v67_v24  ;;  %572 = vmatpush3.msra.mxu0 %v34_v25  ;;  %v63_v40 = vld [vmem:[%s1295_s1 + $0x130] sm:$0xff]  ;;  %v78_v42 = vld [vmem:[%s1295_s1 + $0x1a8] sm:$0xff]  ;;  %v29_v45 = vld [vmem:[%s1295_s1 + $0x20] sm:$0xff] }
  0x10   :  { %606 = vmatprep.subr.mxu1 %v82_v26  ;;  %573 = vmatprep.subr.mxu0 %v49_v27  ;;  %v62_v44 = vld [vmem:[%s1295_s1 + $0x128] sm:$0xff]  ;;  %v77_v46 = vld [vmem:[%s1295_s1 + $0x1a0] sm:$0xff]  ;;  %v44_v47 = vld [vmem:[%s1295_s1 + $0x98] sm:$0xff] }
  0x11   :  { %607 = vmatpush3.msra.mxu1 %v66_v28  ;;  %574 = vmatpush3.msra.mxu0 %v33_v29  ;;  %v61_v48 = vld [vmem:[%s1295_s1 + $0x120] sm:$0xff]  ;;  %v28_v49 = vld [vmem:[%s1295_s1 + $0x18] sm:$0xff]  ;;  %v43_v51 = vld [vmem:[%s1295_s1 + $0x90] sm:$0xff] }
  0x12   :  { %608 = vmatprep.subr.mxu1 %v81_v30  ;;  %575 = vmatprep.subr.mxu0 %v48_v31  ;;  %v76_v50 = vld [vmem:[%s1295_s1 + $0x198] sm:$0xff]  ;;  %v27_v53 = vld [vmem:[%s1295_s1 + $0x10] sm:$0xff]  ;;  %v42_v55 = vld [vmem:[%s1295_s1 + $0x88] sm:$0xff] }
  0x13   :  { %609 = vmatpush3.msra.mxu1 %v65_v32  ;;  %576 = vmatpush3.msra.mxu0 %v32_v33  ;;  %v60_v52 = vld [vmem:[%s1295_s1 + $0x118] sm:$0xff]  ;;  %v75_v54 = vld [vmem:[%s1295_s1 + $0x190] sm:$0xff]  ;;  %v26_v57 = vld [vmem:[%s1295_s1 + $0x8] sm:$0xff] }
  0x14   :  { %610 = vmatprep.subr.mxu1 %v80_v34  ;;  %577 = vmatprep.subr.mxu0 %v47_v35  ;;  %v59_v56 = vld [vmem:[%s1295_s1 + $0x110] sm:$0xff]  ;;  %v74_v58 = vld [vmem:[%s1295_s1 + $0x188] sm:$0xff]  ;;  %v41_v59 = vld [vmem:[%s1295_s1 + $0x80] sm:$0xff] }
  0x15   :  { %611 = vmatpush3.msra.mxu1 %v64_v36  ;;  %578 = vmatpush3.msra.mxu0 %v31_v37  ;;  %v16_v60 = vld [vmem:[%s1294_s0 + $0x8] sm:$0xff]  ;;  %v25_v61 = vld [vmem:[%s1295_s1] sm:$0xff]  ;;  %v120_v1 = vld [vmem:[%s1295_s1 + $0x2f8] sm:$0xff] }
  0x16   :  { %612 = vmatprep.subr.mxu1 %v79_v38  ;;  %579 = vmatprep.subr.mxu0 %v46_v39  ;;  %v58_v62 = vld [vmem:[%s1295_s1 + $0x108] sm:$0xff]  ;;  %v15_v63 = vld [vmem:[%s1294_s0] sm:$0xff]  ;;  %v18_v3 = vld [vmem:[%s1294_s0 + $0x18] sm:$0xff] }
  0x17   :  { %613 = vmatpush3.msra.mxu1 %v63_v40  ;;  %580 = vmatpush3.msra.mxu0 %v30_v41  ;;  %v73_v0 = vld [vmem:[%s1295_s1 + $0x180] sm:$0xff]  ;;  %v104_v4 = vld [vmem:[%s1295_s1 + $0x278] sm:$0xff]  ;;  %v17_v5 = vld [vmem:[%s1294_s0 + $0x10] sm:$0xff] }
  0x18   :  { %614 = vmatprep.subr.mxu1 %v78_v42  ;;  %581 = vmatprep.subr.mxu0 %v45_v43  ;;  %v57_v2 = vld [vmem:[%s1295_s1 + $0x100] sm:$0xff]  ;;  %v119_v6 = vld [vmem:[%s1295_s1 + $0x2f0] sm:$0xff]  ;;  %v152_v7 = vld [vmem:[%s1295_s1 + $0x3f8] sm:$0xff] }
  0x19   :  { %615 = vmatpush3.msra.mxu1 %v62_v44  ;;  %582 = vmatpush3.msra.mxu0 %v29_v45  ;;  %v103_v8 = vld [vmem:[%s1295_s1 + $0x270] sm:$0xff]  ;;  %v136_v9 = vld [vmem:[%s1295_s1 + $0x378] sm:$0xff]  ;;  %v118_v10 = vld [vmem:[%s1295_s1 + $0x2e8] sm:$0xff] }
  0x1a   :  { %616 = vmatprep.subr.mxu1 %v77_v46  ;;  %583 = vmatprep.subr.mxu0 %v44_v47  ;;  %v151_v11 = vld [vmem:[%s1295_s1 + $0x3f0] sm:$0xff]  ;;  %v102_v12 = vld [vmem:[%s1295_s1 + $0x268] sm:$0xff]  ;;  %v117_v14 = vld [vmem:[%s1295_s1 + $0x2e0] sm:$0xff] }
  0x1b   :  { %617 = vmatpush3.msra.mxu1 %v61_v48  ;;  %584 = vmatpush3.msra.mxu0 %v28_v49  ;;  %v135_v13 = vld [vmem:[%s1295_s1 + $0x370] sm:$0xff]  ;;  %v150_v15 = vld [vmem:[%s1295_s1 + $0x3e8] sm:$0xff]  ;;  %v101_v16 = vld [vmem:[%s1295_s1 + $0x260] sm:$0xff] }
  0x1c   :  { %618 = vmatprep.subr.mxu1 %v76_v50  ;;  %585 = vmatprep.subr.mxu0 %v43_v51  ;;  %v134_v17 = vld [vmem:[%s1295_s1 + $0x368] sm:$0xff]  ;;  %v116_v18 = vld [vmem:[%s1295_s1 + $0x2d8] sm:$0xff]  ;;  %v149_v19 = vld [vmem:[%s1295_s1 + $0x3e0] sm:$0xff] }
  0x1d   :  { %619 = vmatpush3.msra.mxu1 %v60_v52  ;;  %586 = vmatpush3.msra.mxu0 %v27_v53  ;;  %v100_v20 = vld [vmem:[%s1295_s1 + $0x258] sm:$0xff]  ;;  %v133_v21 = vld [vmem:[%s1295_s1 + $0x360] sm:$0xff]  ;;  %v115_v22 = vld [vmem:[%s1295_s1 + $0x2d0] sm:$0xff] }
  0x1e   :  { %620 = vmatprep.subr.mxu1 %v75_v54  ;;  %587 = vmatprep.subr.mxu0 %v42_v55  ;;  %v148_v23 = vld [vmem:[%s1295_s1 + $0x3d8] sm:$0xff]  ;;  %v99_v24 = vld [vmem:[%s1295_s1 + $0x250] sm:$0xff]  ;;  %v114_v26 = vld [vmem:[%s1295_s1 + $0x2c8] sm:$0xff] }
  0x1f   :  { %621 = vmatpush3.msra.mxu1 %v59_v56  ;;  %588 = vmatpush3.msra.mxu0 %v26_v57  ;;  %v132_v25 = vld [vmem:[%s1295_s1 + $0x358] sm:$0xff]  ;;  %v147_v27 = vld [vmem:[%s1295_s1 + $0x3d0] sm:$0xff]  ;;  %v98_v28 = vld [vmem:[%s1295_s1 + $0x248] sm:$0xff] }
  0x20   :  { %622 = vmatprep.subr.mxu1 %v74_v58  ;;  %589 = vmatprep.subr.mxu0 %v41_v59  ;;  %v131_v29 = vld [vmem:[%s1295_s1 + $0x350] sm:$0xff]  ;;  %v113_v30 = vld [vmem:[%s1295_s1 + $0x2c0] sm:$0xff]  ;;  %v146_v31 = vld [vmem:[%s1295_s1 + $0x3c8] sm:$0xff] }
  0x21   :  { %256 = vmatprep.mubr.f32.mxu0 %v16_v60  ;;  %590 = vmatpush3.msra.mxu0 %v25_v61  ;;  %v97_v32 = vld [vmem:[%s1295_s1 + $0x240] sm:$0xff]  ;;  %v130_v33 = vld [vmem:[%s1295_s1 + $0x348] sm:$0xff]  ;;  %v112_v34 = vld [vmem:[%s1295_s1 + $0x2b8] sm:$0xff] }
  0x22   :  { %623 = vmatpush3.msra.mxu1 %v58_v62  ;;  %257 = vmatmul.mubr.f32.vlgmr.msra.gmra.mxu0 %v15_v63  ;;  %v145_v35 = vld [vmem:[%s1295_s1 + $0x3c0] sm:$0xff]  ;;  %v96_v36 = vld [vmem:[%s1295_s1 + $0x238] sm:$0xff]  ;;  %v111_v38 = vld [vmem:[%s1295_s1 + $0x2b0] sm:$0xff] }
  0x23   :  { %624 = vmatprep.subr.mxu1 %v73_v0  ;;  %629 = vmatprep.subr.mxu0 %v120_v1  ;;  %v129_v37 = vld [vmem:[%s1295_s1 + $0x340] sm:$0xff]  ;;  %v144_v39 = vld [vmem:[%s1295_s1 + $0x3b8] sm:$0xff]  ;;  %v95_v40 = vld [vmem:[%s1295_s1 + $0x230] sm:$0xff] }
  0x24   :  { %625 = vmatpush3.msra.mxu1 %v57_v2  ;;  %326 = vmatprep.mubr.f32.mxu1 %v18_v3  ;;  %v128_v41 = vld [vmem:[%s1295_s1 + $0x338] sm:$0xff]  ;;  %v110_v42 = vld [vmem:[%s1295_s1 + $0x2a8] sm:$0xff]  ;;  %v143_v43 = vld [vmem:[%s1295_s1 + $0x3b0] sm:$0xff] }
  0x25   :  { %630 = vmatpush3.msra.mxu0 %v104_v4  ;;  %327 = vmatmul.mubr.f32.vlgmr.msra.gmra.mxu1 %v17_v5  ;;  %v94_v44 = vld [vmem:[%s1295_s1 + $0x228] sm:$0xff]  ;;  %v127_v45 = vld [vmem:[%s1295_s1 + $0x330] sm:$0xff]  ;;  %v109_v46 = vld [vmem:[%s1295_s1 + $0x2a0] sm:$0xff] }
  0x26   :  { %631 = vmatprep.subr.mxu0 %v119_v6  ;;  %664 = vmatprep.subr.mxu1 %v152_v7  ;;  %v142_v47 = vld [vmem:[%s1295_s1 + $0x3a8] sm:$0xff]  ;;  %v93_v48 = vld [vmem:[%s1295_s1 + $0x220] sm:$0xff]  ;;  %v108_v50 = vld [vmem:[%s1295_s1 + $0x298] sm:$0xff] }
  0x27   :  { %632 = vmatpush3.msra.mxu0 %v103_v8  ;;  %665 = vmatpush3.msra.mxu1 %v136_v9  ;;  %v126_v49 = vld [vmem:[%s1295_s1 + $0x328] sm:$0xff]  ;;  %v141_v51 = vld [vmem:[%s1295_s1 + $0x3a0] sm:$0xff]  ;;  %v92_v52 = vld [vmem:[%s1295_s1 + $0x218] sm:$0xff] }
  0x28   :  { %633 = vmatprep.subr.mxu0 %v118_v10  ;;  %666 = vmatprep.subr.mxu1 %v151_v11 }
  0x29   :  { %634 = vmatpush3.msra.mxu0 %v102_v12  ;;  %667 = vmatpush3.msra.mxu1 %v135_v13 }
  0x2a   :  { %635 = vmatprep.subr.mxu0 %v117_v14  ;;  %668 = vmatprep.subr.mxu1 %v150_v15 }
  0x2b   :  { %636 = vmatpush3.msra.mxu0 %v101_v16  ;;  %669 = vmatpush3.msra.mxu1 %v134_v17 }
  0x2c   :  { %637 = vmatprep.subr.mxu0 %v116_v18  ;;  %670 = vmatprep.subr.mxu1 %v149_v19 }
  0x2d   :  { %638 = vmatpush3.msra.mxu0 %v100_v20  ;;  %671 = vmatpush3.msra.mxu1 %v133_v21 }
  0x2e   :  { %639 = vmatprep.subr.mxu0 %v115_v22  ;;  %672 = vmatprep.subr.mxu1 %v148_v23 }
  0x2f   :  { %640 = vmatpush3.msra.mxu0 %v99_v24  ;;  %673 = vmatpush3.msra.mxu1 %v132_v25 }
  0x30   :  { %641 = vmatprep.subr.mxu0 %v114_v26  ;;  %674 = vmatprep.subr.mxu1 %v147_v27 }
  0x31   :  { %642 = vmatpush3.msra.mxu0 %v98_v28  ;;  %675 = vmatpush3.msra.mxu1 %v131_v29 }
  0x32   :  { %643 = vmatprep.subr.mxu0 %v113_v30  ;;  %676 = vmatprep.subr.mxu1 %v146_v31 }
  0x33   :  { %644 = vmatpush3.msra.mxu0 %v97_v32  ;;  %677 = vmatpush3.msra.mxu1 %v130_v33 }
  0x34   :  { %645 = vmatprep.subr.mxu0 %v112_v34  ;;  %678 = vmatprep.subr.mxu1 %v145_v35 }
  0x35   :  { %646 = vmatpush3.msra.mxu0 %v96_v36  ;;  %679 = vmatpush3.msra.mxu1 %v129_v37 }
  0x36   :  { %647 = vmatprep.subr.mxu0 %v111_v38  ;;  %680 = vmatprep.subr.mxu1 %v144_v39 }
  0x37   :  { %648 = vmatpush3.msra.mxu0 %v95_v40  ;;  %681 = vmatpush3.msra.mxu1 %v128_v41 }
  0x38   :  { %649 = vmatprep.subr.mxu0 %v110_v42  ;;  %682 = vmatprep.subr.mxu1 %v143_v43 }
  0x39   :  { %650 = vmatpush3.msra.mxu0 %v94_v44  ;;  %683 = vmatpush3.msra.mxu1 %v127_v45 }
  0x3a   :  { %651 = vmatprep.subr.mxu0 %v109_v46 }
  0x3b   :  { %8 = vsyncpa [#allocation3], 0  ;;  %684 = vmatprep.subr.mxu1 %v142_v47  ;;  %652 = vmatpush3.msra.mxu0 %v93_v48  ;;  %v125_v53 = vld [vmem:[%s1295_s1 + $0x320] sm:$0xff]  ;;  %v107_v54 = vld [vmem:[%s1295_s1 + $0x290] sm:$0xff]  ;;  %vm542_vm0 = vcmask 39936  }
  0x3c   :  { %685 = vmatpush3.msra.mxu1 %v126_v49  ;;  %653 = vmatprep.subr.mxu0 %v108_v50  ;;  %v140_v55 = vld [vmem:[%s1295_s1 + $0x398] sm:$0xff]  ;;  %v91_v56 = vld [vmem:[%s1295_s1 + $0x210] sm:$0xff]  ;;  %v106_v58 = vld [vmem:[%s1295_s1 + $0x288] sm:$0xff] }
  0x3d   :  { %686 = vmatprep.subr.mxu1 %v141_v51  ;;  %654 = vmatpush3.msra.mxu0 %v92_v52  ;;  %v124_v57 = vld [vmem:[%s1295_s1 + $0x318] sm:$0xff]  ;;  %v139_v59 = vld [vmem:[%s1295_s1 + $0x390] sm:$0xff]  ;;  %v90_v60 = vld [vmem:[%s1295_s1 + $0x208] sm:$0xff] }
  0x3e   :  { %687 = vmatpush3.msra.mxu1 %v125_v53  ;;  %655 = vmatprep.subr.mxu0 %v107_v54  ;;  %v123_v61 = vld [vmem:[%s1295_s1 + $0x310] sm:$0xff]  ;;  %v105_v62 = vld [vmem:[%s1295_s1 + $0x280] sm:$0xff]  ;;  %v138_v63 = vld [vmem:[%s1295_s1 + $0x388] sm:$0xff] }
  0x3f   :  { %688 = vmatprep.subr.mxu1 %v140_v55  ;;  %656 = vmatpush3.msra.mxu0 %v91_v56  ;;  %v89_v0 = vld [vmem:[%s1295_s1 + $0x200] sm:$0xff]  ;;  %v20_v1 = vld [vmem:[%s1294_s0 + $0x28] sm:$0xff]  ;;  %v184_v5 = vld [vmem:[%s1295_s1 + $0x4f8] sm:$0xff] }
  0x40   :  { %689 = vmatpush3.msra.mxu1 %v124_v57  ;;  %657 = vmatprep.subr.mxu0 %v106_v58  ;;  %v122_v2 = vld [vmem:[%s1295_s1 + $0x308] sm:$0xff]  ;;  %v19_v3 = vld [vmem:[%s1294_s0 + $0x20] sm:$0xff]  ;;  %v22_v7 = vld [vmem:[%s1294_s0 + $0x38] sm:$0xff] }
  0x41   :  { %690 = vmatprep.subr.mxu1 %v139_v59  ;;  %658 = vmatpush3.msra.mxu0 %v90_v60  ;;  %v137_v4 = vld [vmem:[%s1295_s1 + $0x380] sm:$0xff]  ;;  %v168_v8 = vld [vmem:[%s1295_s1 + $0x478] sm:$0xff]  ;;  %v21_v9 = vld [vmem:[%s1294_s0 + $0x30] sm:$0xff] }
  0x42   :  { %691 = vmatpush3.msra.mxu1 %v123_v61  ;;  %659 = vmatprep.subr.mxu0 %v105_v62  ;;  %v121_v6 = vld [vmem:[%s1295_s1 + $0x300] sm:$0xff]  ;;  %v183_v10 = vld [vmem:[%s1295_s1 + $0x4f0] sm:$0xff]  ;;  %v24_v12 = vld [vmem:[%s1294_s0 + $0x48] sm:$0xff] }
  0x43   :  { %692 = vmatprep.subr.mxu1 %v138_v63  ;;  %660 = vmatpush3.msra.mxu0 %v89_v0  ;;  %v167_v11 = vld [vmem:[%s1295_s1 + $0x470] sm:$0xff]  ;;  %v182_v13 = vld [vmem:[%s1295_s1 + $0x4e8] sm:$0xff]  ;;  %v181_v15 = vld [vmem:[%s1295_s1 + $0x4e0] sm:$0xff] }
  0x44   :  { %396 = vmatprep.mubr.f32.mxu0 %v20_v1  ;;  %693 = vmatpush3.msra.mxu1 %v122_v2  ;;  %v166_v14 = vld [vmem:[%s1295_s1 + $0x468] sm:$0xff]  ;;  %v165_v16 = vld [vmem:[%s1295_s1 + $0x460] sm:$0xff]  ;;  %v180_v17 = vld [vmem:[%s1295_s1 + $0x4d8] sm:$0xff] }
  0x45   :  { %397 = vmatmul.mubr.f32.vlgmr.msra.gmra.mxu0 %v19_v3  ;;  %694 = vmatprep.subr.mxu1 %v137_v4  ;;  %v164_v18 = vld [vmem:[%s1295_s1 + $0x458] sm:$0xff]  ;;  %v179_v19 = vld [vmem:[%s1295_s1 + $0x4d0] sm:$0xff]  ;;  %v178_v21 = vld [vmem:[%s1295_s1 + $0x4c8] sm:$0xff] }
  0x46   :  { %699 = vmatprep.subr.mxu0 %v184_v5  ;;  %695 = vmatpush3.msra.mxu1 %v121_v6  ;;  %v163_v20 = vld [vmem:[%s1295_s1 + $0x450] sm:$0xff]  ;;  %v162_v22 = vld [vmem:[%s1295_s1 + $0x448] sm:$0xff]  ;;  %v177_v23 = vld [vmem:[%s1295_s1 + $0x4c0] sm:$0xff] }
  0x47   :  { %466 = vmatprep.mubr.f32.mxu1 %v22_v7  ;;  %700 = vmatpush3.msra.mxu0 %v168_v8  ;;  %v161_v24 = vld [vmem:[%s1295_s1 + $0x440] sm:$0xff]  ;;  %v176_v25 = vld [vmem:[%s1295_s1 + $0x4b8] sm:$0xff]  ;;  %v175_v27 = vld [vmem:[%s1295_s1 + $0x4b0] sm:$0xff] }
  0x48   :  { %467 = vmatmul.mubr.f32.vlgmr.msra.gmra.mxu1 %v21_v9  ;;  %701 = vmatprep.subr.mxu0 %v183_v10  ;;  %v160_v26 = vld [vmem:[%s1295_s1 + $0x438] sm:$0xff]  ;;  %v159_v28 = vld [vmem:[%s1295_s1 + $0x430] sm:$0xff]  ;;  %v174_v29 = vld [vmem:[%s1295_s1 + $0x4a8] sm:$0xff] }
  0x49   :  { %702 = vmatpush3.msra.mxu0 %v167_v11  ;;  %536 = vmatprep.mubr.f32.mxu0 %v24_v12  ;;  %v158_v30 = vld [vmem:[%s1295_s1 + $0x428] sm:$0xff]  ;;  %v173_v31 = vld [vmem:[%s1295_s1 + $0x4a0] sm:$0xff]  ;;  %v172_v33 = vld [vmem:[%s1295_s1 + $0x498] sm:$0xff] }
  0x4a   :  { %703 = vmatprep.subr.mxu0 %v182_v13  ;;  %v157_v32 = vld [vmem:[%s1295_s1 + $0x420] sm:$0xff]  ;;  %v156_v34 = vld [vmem:[%s1295_s1 + $0x418] sm:$0xff]  ;;  %v171_v35 = vld [vmem:[%s1295_s1 + $0x490] sm:$0xff] }
  0x4b   :  { %704 = vmatpush3.msra.mxu0 %v166_v14  ;;  %v155_v36 = vld [vmem:[%s1295_s1 + $0x410] sm:$0xff]  ;;  %v170_v37 = vld [vmem:[%s1295_s1 + $0x488] sm:$0xff]  ;;  %v169_v39 = vld [vmem:[%s1295_s1 + $0x480] sm:$0xff] }
  0x4c   :  { %705 = vmatprep.subr.mxu0 %v181_v15  ;;  %v154_v38 = vld [vmem:[%s1295_s1 + $0x408] sm:$0xff]  ;;  %v153_v40 = vld [vmem:[%s1295_s1 + $0x400] sm:$0xff] }
  0x4d   :  { %706 = vmatpush3.msra.mxu0 %v165_v16  ;;  %v23_v41 = vld [vmem:[%s1294_s0 + $0x40] sm:$0xff]  ;;  %s757_s0 = smov [#allocation2]  }
  0x4e   :  { %707 = vmatprep.subr.mxu0 %v180_v17  ;;  %v558_v47 = vld [vmem:[%s1296_s2] ss:$0 sm:$0xff]  ;;  %s550_s1 = sshll.u32 %s757_s0, 4  ;;  %s551_s1 = int_to_ptr.vmem [resolvable:$true] %s550_s1 }
  0x4f   :  { %708 = vmatpush3.msra.mxu0 %v164_v18  ;;  %s735_s2 = scalar_lea.vmem %s551_s1, 128  ;;  %p740_p1 = scmp.lt.s32.totalorder %s551_s1, %s551_s1 }
  0x50   :  { %709 = vmatprep.subr.mxu0 %v179_v19  ;;  %p736_p0 = scmp.ne.s32.totalorder %s551_s1, %s735_s2  ;;  %p741_p2 = scmp.lt.s32.totalorder %s735_s2, %s735_s2 }
  0x51   :  { %710 = vmatpush3.msra.mxu0 %v163_v20 }
  0x52   :  { %711 = vmatprep.subr.mxu0 %v178_v21  ;;  %p742_p3 = por %p741_p2, %p740_p1 }
  0x53   :  { %712 = vmatpush3.msra.mxu0 %v162_v22 }
  0x54   :  { %713 = vmatprep.subr.mxu0 %v177_v23  ;;  %p743_p4 = pnand %p742_p3, %p736_p0 }
  0x55   :  { %714 = vmatpush3.msra.mxu0 %v161_v24 }
  0x56   :  { %715 = vmatprep.subr.mxu0 %v176_v25 }
  0x57   :  { %716 = vmatpush3.msra.mxu0 %v160_v26 }
  0x58   :  { %717 = vmatprep.subr.mxu0 %v175_v27 }
  0x59   :  { %718 = vmatpush3.msra.mxu0 %v159_v28 }
  0x5a   :  { %719 = vmatprep.subr.mxu0 %v174_v29 }
  0x5b   :  { %720 = vmatpush3.msra.mxu0 %v158_v30 }
  0x5c   :  { %721 = vmatprep.subr.mxu0 %v173_v31 }
  0x5d   :  { %722 = vmatpush3.msra.mxu0 %v157_v32 }
  0x5e   :  { %723 = vmatprep.subr.mxu0 %v172_v33 }
  0x5f   :  { %724 = vmatpush3.msra.mxu0 %v156_v34 }
  0x60   :  { %725 = vmatprep.subr.mxu0 %v171_v35 }
  0x61   :  { %726 = vmatpush3.msra.mxu0 %v155_v36 }
  0x62   :  { %727 = vmatprep.subr.mxu0 %v170_v37 }
  0x63   :  { %728 = vmatpush3.msra.mxu0 %v154_v38 }
  0x64   :  { %729 = vmatprep.subr.mxu0 %v169_v39 }
  0x65   :  { %730 = vmatpush3.msra.mxu0 %v153_v40 }
  0x66   :  { %537 = vmatmul.mubr.f32.vlgmr.msra.gmra.mxu0 %v23_v41 }
  0xe2   :  { %v591_v42 = vpop.f32.mrf.mxu0 }
  0xe4   :  { %v592_v43 = vpop.f32.mrf.mxu0 }
  0xe5   :  { %v626_v44 = vpop.f32.mrf.mxu1  ;;  %v593_v46 = vadd.f32 %v592_v43, %v591_v42 }
  0xe7   :  { %v627_v48 = vpop.f32.mrf.mxu1  ;;  %v259_v51 = vadd.f32 %v593_v46, %v558_v47 }
  0xe8   :  { %v628_v52 = vadd.f32 %v627_v48, %v626_v44 }
  0xea   :  { %v329_v55 = vadd.f32 %v628_v52, %v259_v51 }
 0x105   :  { %v661_v45 = vpop.f32.mrf.mxu0 }
 0x107   :  { %v662_v49 = vpop.f32.mrf.mxu0 }
 0x108   :  { %v696_v50 = vpop.f32.mrf.mxu1  ;;  %v663_v53 = vadd.f32 %v662_v49, %v661_v45 }
 0x10a   :  { %v697_v54 = vpop.f32.mrf.mxu1  ;;  %v399_v56 = vadd.f32 %v663_v53, %v329_v55 }
 0x10b   :  { %v698_v57 = vadd.f32 %v697_v54, %v696_v50 }
 0x10d   :  { %v469_v60 = vadd.f32 %v698_v57, %v399_v56 }
 0x126   :  { %v731_v58 = vpop.f32.mrf.mxu0 }
 0x128   :  { %v732_v59 = vpop.f32.mrf.mxu0 }
 0x129   :  { %v733_v61 = vadd.f32 %v732_v59, %v731_v58 }
 0x12b   :  { %v539_v62 = vadd.f32 %v733_v61, %v469_v60 }
 0x12d   :  { %543 = vst.msk [vmem:[#allocation2] sm:$0xff] %vm542_vm0, %v539_v62 }
 0x12e   :  { %746 = shalt.err (!%p743_p4)
}
 0x12f   :  { %553 = dma.vmem_to_hbm [thread:$0]  %s551_s1, 128, %s1297_s3, [#allocation3]  }
 0x130   :  { %755 = dma.done.wait [#allocation3], 128  }
 0x131   :  { %756 = vsyncadd [#allocation3], 4294967168 }
 0x132   :  { %557 = vsyncpa [#allocation3], 1 }

</bundles_post_ra>
